<compile_context>
chip_gen: v6e
topology: v6e:2x2x1
jax: 0.10.0
libtpu: 0.0.40
codegen_flags: <defaults>
</compile_context>

<pallas_src>
import jax
import jax.numpy as jnp
from jax.experimental import pallas as pl
from jax.experimental.pallas import tpu as pltpu


def _round_up(x, m):
    return (x + m - 1) // m * m


def _make_pssvf_kernel(num_layers, activation=jnp.tanh):
    """Kernel for an MLP with `num_layers` Linear layers, `activation` between them,
    identity on the output layer (matches mlp(..., output_activation=nn.Identity))."""

    def kernel(*refs):
        # refs = (x, W1, b1, W2, b2, ..., Wn, bn, out)
        x_ref = refs[0]
        param_refs = refs[1:1 + 2 * num_layers]
        out_ref = refs[-1]

        h = x_ref[...]                                       # bf16 (TB, D) batch tile
        for j in range(num_layers):
            w = param_refs[2 * j][...]                       # bf16 (in_j, out_j), resident
            b = param_refs[2 * j + 1][...]                   # f32  (1, out_j),    resident
            z = jnp.dot(h, w, preferred_element_type=jnp.float32) + b   # f32 accumulate
            if j < num_layers - 1:
                h = activation(z).astype(w.dtype)            # tanh in f32, bf16 for next MXU op
            else:
                h = z                                        # identity output activation
        out_ref[...] = h                                     # (TB, 1) f32 value column

    return kernel


def pssvf_forward(parameters, mlp_params, *, tile_rows=512,
                  param_dtype=jnp.bfloat16, activation=jnp.tanh):
    """PSSVF_linear.forward.

    parameters: (batch, parameter_space_dim) array.
    mlp_params: [(W, b), ...] with W of shape (in_features, out_features), b (out_features,).
    Returns a (batch,) f32 value estimate (== torch.squeeze(v_net(parameters), -1)).
    """
    batch, in_dim = parameters.shape
    num_layers = len(mlp_params)

    # Batch tile: multiple of 8 (sublane), clamped to the rounded-up batch.
    tb = _round_up(min(tile_rows, _round_up(batch, 8)), 8)
    padded = _round_up(batch, tb)

    x = parameters.astype(param_dtype)
    if padded != batch:
        # Pad so every grid step is a full tile; padded rows are sliced off below.
        x = jnp.pad(x, ((0, padded - batch), (0, 0)))

    flat_params = []
    flat_specs = []
    for w, b in mlp_params:
        flat_params.append(w.astype(param_dtype))
        flat_specs.append(pl.BlockSpec(w.shape, lambda i: (0, 0)))            # VMEM resident
        flat_params.append(b.reshape(1, -1).astype(jnp.float32))
        flat_specs.append(pl.BlockSpec((1, b.shape[-1]), lambda i: (0, 0)))   # VMEM resident

    grid = (padded // tb,)
    kernel = _make_pssvf_kernel(num_layers, activation)

    out = pl.pallas_call(
        kernel,
        out_shape=jax.ShapeDtypeStruct((padded, 1), jnp.float32),
        grid=grid,
        in_specs=[pl.BlockSpec((tb, in_dim), lambda i: (i, 0))] + flat_specs,
        out_specs=pl.BlockSpec((tb, 1), lambda i: (i, 0)),
        compiler_params=pltpu.CompilerParams(
            dimension_semantics=("parallel",),        # shard grid across v7x's 2 TCs
            vmem_limit_bytes=32 * 1024 * 1024,
        ),
    )(x, *flat_params)

    return out[:batch, 0]


def init_params(key, sizes):
    """Deterministic init mimicking nn.Linear default (uniform +/- 1/sqrt(fan_in))."""
    params = []
    for j in range(len(sizes) - 1):
        fan_in, fan_out = sizes[j], sizes[j + 1]
        key, kw, kb = jax.random.split(key, 3)
        bound = 1.0 / (float(fan_in) ** 0.5)
        w = jax.random.uniform(kw, (fan_in, fan_out), jnp.float32, -bound, bound)
        b = jax.random.uniform(kb, (fan_out,), jnp.float32, -bound, bound)
        params.append((w, b))
    return params


def reference_forward(parameters, mlp_params, param_dtype=jnp.bfloat16):
    """Pure-JAX reference mirroring the kernel's bf16 streaming so the comparison is tight."""
    h = parameters.astype(param_dtype).astype(jnp.float32)
    z = h
    for j, (w, b) in enumerate(mlp_params):
        z = h @ w.astype(param_dtype).astype(jnp.float32) + b
        if j < len(mlp_params) - 1:
            h = jnp.tanh(z).astype(param_dtype).astype(jnp.float32)
    return jnp.squeeze(z, -1)


if __name__ == "__main__":
    # Small shapes consistent with PSSVF_linear: parameter_space_dim=64, hidden_sizes=(32, 32),
    # output dim 1, tanh hidden activation.
    batch, param_space_dim = 512, 64
    hidden_sizes = (32, 32)
    sizes = [param_space_dim] + list(hidden_sizes) + [1]

    key = jax.random.PRNGKey(0)
    key, kx = jax.random.split(key)
    parameters = jax.random.normal(kx, (batch, param_space_dim), jnp.float32)
    mlp_params = init_params(key, sizes)

    # tile_rows=128 -> 4 pipelined grid steps even at this small demo batch
    # (default tile_rows=512 for realistic batches).
    values = pssvf_forward(parameters, mlp_params, tile_rows=128)
    jax.block_until_ready(values)

    assert values.shape == (batch,)
    ref = reference_forward(parameters, mlp_params)
    assert jnp.allclose(values, ref, atol=1e-3, rtol=1e-3), float(
        jnp.max(jnp.abs(values - ref)))

    print("KERNEL_OK")
</pallas_src>

<mosaic_0001>
module attributes {stable_mosaic.version = 11 : i64} {
  func.func @kernel(%arg0: i32, %arg1: memref<128x64xbf16, #tpu.memory_space<vmem>>, %arg2: memref<64x32xbf16, #tpu.memory_space<vmem>>, %arg3: memref<1x32xf32, #tpu.memory_space<vmem>>, %arg4: memref<32x32xbf16, #tpu.memory_space<vmem>>, %arg5: memref<1x32xf32, #tpu.memory_space<vmem>>, %arg6: memref<32x1xbf16, #tpu.memory_space<vmem>>, %arg7: memref<1x1xf32, #tpu.memory_space<vmem>>, %arg8: memref<128x1xf32, #tpu.memory_space<vmem>>) attributes {dimension_semantics = [#tpu.dimension_semantics<parallel>], iteration_bounds = array<i64: 4>, scalar_prefetch = 0 : i64, scratch_operands = 0 : i64, tpu.core_type = #tpu.core_type<tc>, window_params = [{transform_indices = @transform_0, window_bounds = array<i64: 128, 64>}, {pipeline_mode = #tpu.pipeline_mode<synchronous>, transform_indices = @transform_1, window_bounds = array<i64: 64, 32>}, {pipeline_mode = #tpu.pipeline_mode<synchronous>, transform_indices = @transform_2, window_bounds = array<i64: 1, 32>}, {pipeline_mode = #tpu.pipeline_mode<synchronous>, transform_indices = @transform_3, window_bounds = array<i64: 32, 32>}, {pipeline_mode = #tpu.pipeline_mode<synchronous>, transform_indices = @transform_4, window_bounds = array<i64: 1, 32>}, {pipeline_mode = #tpu.pipeline_mode<synchronous>, transform_indices = @transform_5, window_bounds = array<i64: 32, 1>}, {pipeline_mode = #tpu.pipeline_mode<synchronous>, transform_indices = @transform_6, window_bounds = array<i64: 1, 1>}, {transform_indices = @transform_7, window_bounds = array<i64: 128, 1>}]} {
    %c0 = arith.constant 0 : index
    %c0_0 = arith.constant 0 : index
    %0 = vector.load %arg1[%c0, %c0_0] : memref<128x64xbf16, #tpu.memory_space<vmem>>, vector<128x64xbf16>
    %c0_1 = arith.constant 0 : index
    %c0_2 = arith.constant 0 : index
    %1 = vector.load %arg2[%c0_1, %c0_2] : memref<64x32xbf16, #tpu.memory_space<vmem>>, vector<64x32xbf16>
    %c0_3 = arith.constant 0 : index
    %c0_4 = arith.constant 0 : index
    %2 = vector.load %arg3[%c0_3, %c0_4] : memref<1x32xf32, #tpu.memory_space<vmem>>, vector<1x32xf32>
    %cst = arith.constant dense<0.000000e+00> : vector<128x32xf32>
    %3 = tpu.matmul %0, %1, %cst {dimension_numbers = #tpu.dot_dimension_numbers<[1], [0], [0], [1], [0, 0, 1, 1], [], []>} : vector<128x64xbf16>, vector<64x32xbf16>, vector<128x32xf32> -> vector<128x32xf32>
    %4 = vector.broadcast %2 : vector<1x32xf32> to vector<128x32xf32>
    %5 = arith.addf %3, %4 : vector<128x32xf32>
    %6 = math.tanh %5 : vector<128x32xf32>
    %7 = arith.truncf %6 : vector<128x32xf32> to vector<128x32xbf16>
    %c0_5 = arith.constant 0 : index
    %c0_6 = arith.constant 0 : index
    %8 = vector.load %arg4[%c0_5, %c0_6] : memref<32x32xbf16, #tpu.memory_space<vmem>>, vector<32x32xbf16>
    %c0_7 = arith.constant 0 : index
    %c0_8 = arith.constant 0 : index
    %9 = vector.load %arg5[%c0_7, %c0_8] : memref<1x32xf32, #tpu.memory_space<vmem>>, vector<1x32xf32>
    %cst_9 = arith.constant dense<0.000000e+00> : vector<128x32xf32>
    %10 = tpu.matmul %7, %8, %cst_9 {dimension_numbers = #tpu.dot_dimension_numbers<[1], [0], [0], [1], [0, 0, 1, 1], [], []>} : vector<128x32xbf16>, vector<32x32xbf16>, vector<128x32xf32> -> vector<128x32xf32>
    %11 = vector.broadcast %9 : vector<1x32xf32> to vector<128x32xf32>
    %12 = arith.addf %10, %11 : vector<128x32xf32>
    %13 = math.tanh %12 : vector<128x32xf32>
    %14 = arith.truncf %13 : vector<128x32xf32> to vector<128x32xbf16>
    %c0_10 = arith.constant 0 : index
    %c0_11 = arith.constant 0 : index
    %15 = vector.load %arg6[%c0_10, %c0_11] : memref<32x1xbf16, #tpu.memory_space<vmem>>, vector<32x1xbf16>
    %c0_12 = arith.constant 0 : index
    %c0_13 = arith.constant 0 : index
    %16 = vector.load %arg7[%c0_12, %c0_13] : memref<1x1xf32, #tpu.memory_space<vmem>>, vector<1x1xf32>
    %cst_14 = arith.constant dense<0.000000e+00> : vector<128x1xf32>
    %17 = tpu.matmul %14, %15, %cst_14 {dimension_numbers = #tpu.dot_dimension_numbers<[1], [0], [0], [1], [0, 0, 1, 1], [], []>} : vector<128x32xbf16>, vector<32x1xbf16>, vector<128x1xf32> -> vector<128x1xf32>
    %18 = vector.broadcast %16 : vector<1x1xf32> to vector<128x1xf32>
    %19 = arith.addf %17, %18 : vector<128x1xf32>
    %c0_15 = arith.constant 0 : index
    %c0_16 = arith.constant 0 : index
    %20 = vector.load %arg8[%c0_15, %c0_16] : memref<128x1xf32, #tpu.memory_space<vmem>>, vector<128x1xf32>
    tpu.vector_store %arg8[%c0_15, %c0_16], %19 {strides = array<i32>} : memref<128x1xf32, #tpu.memory_space<vmem>>, vector<128x1xf32>,
    return
  }
  func.func @transform_0(%arg0: i32) -> (i32, i32) {
    %c0_i32 = arith.constant 0 : i32
    %c0_i32_0 = arith.constant 0 : i32
    return %arg0, %c0_i32 : i32, i32
  }
  func.func @transform_1(%arg0: i32) -> (i32, i32) {
    %c0_i32 = arith.constant 0 : i32
    %c0_i32_0 = arith.constant 0 : i32
    %c0_i32_1 = arith.constant 0 : i32
    return %c0_i32, %c0_i32_0 : i32, i32
  }
  func.func @transform_2(%arg0: i32) -> (i32, i32) {
    %c0_i32 = arith.constant 0 : i32
    %c0_i32_0 = arith.constant 0 : i32
    %c0_i32_1 = arith.constant 0 : i32
    return %c0_i32, %c0_i32_0 : i32, i32
  }
  func.func @transform_3(%arg0: i32) -> (i32, i32) {
    %c0_i32 = arith.constant 0 : i32
    %c0_i32_0 = arith.constant 0 : i32
    %c0_i32_1 = arith.constant 0 : i32
    return %c0_i32, %c0_i32_0 : i32, i32
  }
  func.func @transform_4(%arg0: i32) -> (i32, i32) {
    %c0_i32 = arith.constant 0 : i32
    %c0_i32_0 = arith.constant 0 : i32
    %c0_i32_1 = arith.constant 0 : i32
    return %c0_i32, %c0_i32_0 : i32, i32
  }
  func.func @transform_5(%arg0: i32) -> (i32, i32) {
    %c0_i32 = arith.constant 0 : i32
    %c0_i32_0 = arith.constant 0 : i32
    %c0_i32_1 = arith.constant 0 : i32
    return %c0_i32, %c0_i32_0 : i32, i32
  }
  func.func @transform_6(%arg0: i32) -> (i32, i32) {
    %c0_i32 = arith.constant 0 : i32
    %c0_i32_0 = arith.constant 0 : i32
    %c0_i32_1 = arith.constant 0 : i32
    return %c0_i32, %c0_i32_0 : i32, i32
  }
  func.func @transform_7(%arg0: i32) -> (i32, i32) {
    %c0_i32 = arith.constant 0 : i32
    %c0_i32_0 = arith.constant 0 : i32
    return %arg0, %c0_i32 : i32, i32
  }
}

</mosaic_0001>

<bundles_post_ra>
// kernel: tpu_custom_call.1
= control target key start
LH: loop header
LB: loop body
LE: loop exit
PB: predicated region body
PF: predicated region fallthrough
CT: control target
= control target key end

     0   :  { %s1205_s26 = smov 0   ;;  %s1314_s0 = inlined_call_operand.vmem [shape: bf16[512,64], index: 0, kind: input, shape index: {}]   ;;  %s1315_s1 = inlined_call_operand.vmem [shape: bf16[64,32], index: 1, kind: input, shape index: {}]   ;;  %s1316_s2 = inlined_call_operand.vmem [shape: f32[1,32], index: 2, kind: input, shape index: {}]   ;;  %s1317_s3 = inlined_call_operand.vmem [shape: bf16[32,32], index: 3, kind: input, shape index: {}]   ;;  %s1318_s4 = inlined_call_operand.vmem [shape: f32[1,32], index: 4, kind: input, shape index: {}]   ;;  %s1319_s5 = inlined_call_operand.vmem [shape: bf16[32,1], index: 5, kind: input, shape index: {}]   ;;  %s1320_s6 = inlined_call_operand.<no memory space> [shape: f32[1,1], index: 6, kind: input, shape index: {}]   ;;  %s1321_s7 = inlined_call_operand.vmem [shape: f32[512,1], index: 7, kind: output, shape index: {}]  }
   0x1   :  { %v12_v0 = vstv %s1320_s6 }
   0x2   :  { %13 = vst [vmem:[#allocation2] sm:$0x1] %v12_v0 }
   0x3 LB: > { %s912_s27 = sadd.s32 4294967295, %s1160_s26   ;;  %p916_p0 = scmp.ge.s32.totalorder %s1160_s26, 1  ;;  %s1160_s26 = sphi %s1205_s26, %s19_s26  }
   0x4   : > { %p240_p1 = scmp.lt.s32.totalorder %s1160_s26, 5 }
   0x6   : > { %p241_p2 = pnand %p916_p0, %p240_p1 }
   0x7   : > { %s917_s6 = sshll.u32 (!%p241_p2), %s912_s27, 4 }
   0x8   : > { %244 = sbr.rel (%p241_p2) target bundleno = 692 (0x2b4), region = 48  ;;  %p273_p3 = scmp.lt.s32.totalorder (!%p241_p2), %s917_s6, 63 }
   0xd   : > { %v1074_v1 = vld [vmem:[%s1315_s1 + $0x18] sm:$0xff]   ;;  %v1075_v2 = vld [vmem:[%s1315_s1 + $0x10] sm:$0xff]   ;;  %v1076_v3 = vld [vmem:[%s1315_s1 + $0x8] sm:$0xff]   ;;  %s1323_s6 = smov (!%p273_p3, %s917_s6), 63  ;;  %vm380_vm0 = vcmask 523264   ;;  %vm549_vm1 = vcmask 261120  }
   0xe   : > { %998 = vmatprep.subr.bf16.mxu0 %v1074_v1  ;;  %v1086_v4 = vld [vmem:[%s1317_s3 + $0x8] sm:$0xff]   ;;  %s918_s13 = sshll.u32 %s1323_s6, 2  ;;  %v1077_v6 = vld [vmem:[%s1315_s1] sm:$0xff]   ;;  %s920_s30 = sshll.u32 %s1323_s6, 3  ;;  %vm839_vm2 = vcmask 7168  }
   0xf   : > { %999 = vmatpush3.bf16.msra.mxu0 %v1074_v1  ;;  %s276_s16 = scalar_lea.vmem %s1314_s0, %s918_s13  ;;  %1062 = vmatprep.subr.bf16.mxu1 %v1086_v4  ;;  %v1087_v14 = vld [vmem:[%s1317_s3] sm:$0xff]   ;;  %s1277_s10 = scalar_lea.vmem %s1321_s7, %s920_s30 }
  0x10   : > { %1000 = vmatprep.subr.bf16.mxu0 %v1075_v2  ;;  %v1078_v5 = vld [vmem:[%s276_s16] sm:$0xff]   ;;  %1064 = vmatpush3.bf16.msra.mxu1 %v1086_v4  ;;  %v1079_v7 = vld [vmem:[%s276_s16 + $0x8] sm:$0xff]   ;;  %v1080_v8 = vld [vmem:[%s276_s16 + $0x10] sm:$0xff]  }
  0x11   : > { %1006 = vmatprep.mubr.msk.bf16.mxu0 %vm380_vm0, %v1078_v5  ;;  %v1081_v9 = vld [vmem:[%s276_s16 + $0x18] sm:$0xff]   ;;  %v1082_v10 = vld [vmem:[%s276_s16 + $0x20] sm:$0xff]   ;;  %v1083_v11 = vld [vmem:[%s276_s16 + $0x28] sm:$0xff]   ;;  %1063 = vmatprep.subr.bf16.mxu1 %v1087_v14 }
  0x12   : > { %v1084_v12 = vld [vmem:[%s276_s16 + $0x30] sm:$0xff]   ;;  %v1085_v13 = vld [vmem:[%s276_s16 + $0x38] sm:$0xff]   ;;  %v921_v16 = vld [vmem:[%s1316_s2] ss:$0 sm:$0xff] }
  0x13   : > { %1001 = vmatpush3.bf16.msra.mxu0 %v1075_v2 }
  0x14   : > { %1002 = vmatprep.subr.bf16.mxu0 %v1076_v3  ;;  %1065 = vmatpush3.bf16.msra.mxu1 %v1087_v14 }
  0x17   : > { %1003 = vmatpush3.bf16.msra.mxu0 %v1076_v3 }
  0x18   : > { %1004 = vmatprep.subr.bf16.mxu0 %v1077_v6 }
  0x1b   : > { %1005 = vmatpush3.bf16.msra.mxu0 %v1077_v6 }
  0x1c   : > { %1022 = vmatprep.subr.bf16.mxu0 %v1086_v4 }
  0x1e   : > { %1007 = vmatmul.mubr.msk.bf16.vlgmr.msra.gmra.mxu0 %vm380_vm0, %v1079_v7 }
  0x1f   : > { %1010 = vmatprep.mubr.msk.bf16.mxu0 %vm380_vm0, %v1080_v8  ;;  %1023 = vmatpush3.bf16.msra.mxu0 %v1086_v4  ;;  %v1088_v8 = vld [vmem:[%s1319_s5 + $0x8] sm:$0xff]  }
  0x20   : > { %1024 = vmatprep.subr.bf16.mxu0 %v1087_v14  ;;  %1042 = vmatprep.subr.bf16.mxu1 %v1088_v8 }
  0x23   : > { %1025 = vmatpush3.bf16.msra.mxu0 %v1087_v14 }
  0x26   : > { %1011 = vmatmul.mubr.msk.bf16.gmra.mxu0 %vm380_vm0, %v1081_v9  ;;  %v1089_v9 = vld [vmem:[%s1319_s5] sm:$0xff]  }
  0x27   : > { %1014 = vmatprep.mubr.msk.bf16.mxu0 %vm380_vm0, %v1082_v10 }
  0x2e   : > { %1015 = vmatmul.mubr.msk.bf16.gmra.mxu0 %vm380_vm0, %v1083_v11  ;;  %v942_v11 = vld [vmem:[%s1318_s4] ss:$0 sm:$0xff] }
  0x2f   : > { %1018 = vmatprep.mubr.msk.bf16.mxu0 %vm380_vm0, %v1084_v12 }
  0x36   : > { %1019 = vmatmul.mubr.msk.bf16.gmra.mxu0 %vm380_vm0, %v1085_v13 }
  0xde   : > { %v1008_v15 = vpop.f32.mrf.mxu0 }
  0xdf   : > { %v448_v21 = vadd.f32 %v1008_v15, %v921_v16 }
  0xe0   : > { %v439_v17 = vpop.f32.mrf.mxu0 }
  0xe1   : > { %v440_v18 = vadd.f32 %v921_v16, %v439_v17 }
  0xe2   : > { %v1009_v19 = vpop.f32.mrf.mxu0 }
  0xe3   : > { %v451_v20 = vadd.f32 %v1009_v19, %v921_v16  ;;  %1090 = vtanh.f32 %v440_v18 }
  0xe4   : > { %v442_v22 = vpop.f32.mrf.mxu0 }
  0xe5   : > { %v443_v23 = vadd.f32 %v921_v16, %v442_v22  ;;  %1092 = vtanh.f32 %v451_v20 }
  0xe6   : > { %v1012_v24 = vpop.f32.mrf.mxu0 }
  0xe7   : > { %1094 = vtanh.f32 %v443_v23  ;;  %v464_v29 = vadd.f32 %v1012_v24, %v921_v16 }
  0xe8   : > { %1096 = vtanh.f32 %v448_v21  ;;  %v455_v25 = vpop.f32.mrf.mxu0 }
  0xe9   : > { %v456_v26 = vadd.f32 %v921_v16, %v455_v25 }
  0xea   : > { %v1013_v27 = vpop.f32.mrf.mxu0 }
  0xeb   : > { %v467_v28 = vadd.f32 %v1013_v27, %v921_v16  ;;  %1098 = vtanh.f32 %v456_v26 }
  0xec   : > { %v458_v30 = vpop.f32.mrf.mxu0 }
  0xed   : > { %v459_v31 = vadd.f32 %v921_v16, %v458_v30  ;;  %1100 = vtanh.f32 %v467_v28 }
  0xee   : > { %v1016_v32 = vpop.f32.mrf.mxu0 }
  0xef   : > { %1102 = vtanh.f32 %v459_v31  ;;  %v480_v40 = vadd.f32 %v1016_v32, %v921_v16 }
  0xf0   : > { %1104 = vtanh.f32 %v464_v29  ;;  %v471_v33 = vpop.f32.mrf.mxu0  ;;  %v1091_v35 = vpop.eup %1090 }
  0xf1   : > { %v472_v34 = vadd.f32 %v921_v16, %v471_v33 }
  0xf2   : > { %v1017_v36 = vpop.f32.mrf.mxu0  ;;  %v1093_v37 = vpop.eup %1092 }
  0xf3   : > { %v483_v38 = vadd.f32 %v1017_v36, %v921_v16  ;;  %1106 = vtanh.f32 %v472_v34 }
  0xf4   : > { %v1095_v39 = vpop.eup %1094  ;;  %v474_v41 = vpop.f32.mrf.mxu0 }
  0xf5   : > { %v1097_v42 = vpop.eup %1096  ;;  %v475_v43 = vadd.f32 %v921_v16, %v474_v41  ;;  %v518_v44 = vpack.c.bf16 %v1095_v39, %v1091_v35  ;;  %1108 = vtanh.f32 %v483_v38 }
  0xf6   : > { %v519_v45 = vpack.c.bf16 %v1093_v37, %v1097_v42  ;;  %v1020_v46 = vpop.f32.mrf.mxu0 }
  0xf7   : > { %1110 = vtanh.f32 %v475_v43  ;;  %1026 = vmatprep.mubr.msk.bf16.mxu0 %vm549_vm1, %v518_v44  ;;  %v496_v54 = vadd.f32 %v1020_v46, %v921_v16 }
  0xf8   : > { %1112 = vtanh.f32 %v480_v40  ;;  %v487_v47 = vpop.f32.mrf.mxu0  ;;  %1027 = vmatmul.mubr.msk.bf16.vlgmr.msra.gmra.mxu0 %vm549_vm1, %v519_v45  ;;  %v1099_v49 = vpop.eup %1098 }
  0xf9   : > { %v488_v48 = vadd.f32 %v921_v16, %v487_v47 }
  0xfa   : > { %v1021_v50 = vpop.f32.mrf.mxu0  ;;  %v1101_v51 = vpop.eup %1100 }
  0xfb   : > { %v499_v52 = vadd.f32 %v1021_v50, %v921_v16  ;;  %1114 = vtanh.f32 %v488_v48 }
  0xfc   : > { %v1103_v53 = vpop.eup %1102  ;;  %v490_v55 = vpop.f32.mrf.mxu0 }
  0xfd   : > { %v1105_v56 = vpop.eup %1104  ;;  %v491_v57 = vadd.f32 %v921_v16, %v490_v55  ;;  %v520_v58 = vpack.c.bf16 %v1103_v53, %v1099_v49  ;;  %1116 = vtanh.f32 %v499_v52 }
  0xfe   : > { %v521_v59 = vpack.c.bf16 %v1101_v51, %v1105_v56 }
  0xff   : > { %1118 = vtanh.f32 %v491_v57  ;;  %1030 = vmatprep.mubr.msk.bf16.mxu1 %vm549_vm1, %v520_v58 }
 0x100   : > { %1120 = vtanh.f32 %v496_v54  ;;  %1031 = vmatmul.mubr.msk.bf16.vlgmr.msra.gmra.mxu1 %vm549_vm1, %v521_v59  ;;  %v1107_v60 = vpop.eup %1106 }
 0x101   : > { %1043 = vmatpush3.bf16.msra.mxu1 %v1088_v8 }
 0x102   : > { %v1109_v61 = vpop.eup %1108  ;;  %1044 = vmatprep.subr.bf16.mxu1 %v1089_v9 }
 0x104   : > { %v1111_v62 = vpop.eup %1110 }
 0x105   : > { %v1113_v63 = vpop.eup %1112  ;;  %v522_v0 = vpack.c.bf16 %v1111_v62, %v1107_v60  ;;  %1045 = vmatpush3.bf16.msra.mxu1 %v1089_v9 }
 0x106   : > { %v523_v1 = vpack.c.bf16 %v1109_v61, %v1113_v63 }
 0x107   : > { %1034 = vmatprep.mubr.msk.bf16.mxu1 %vm549_vm1, %v522_v0 }
 0x108   : > { %1035 = vmatmul.mubr.msk.bf16.gmra.mxu1 %vm549_vm1, %v523_v1  ;;  %v1115_v2 = vpop.eup %1114 }
 0x10a   : > { %v1117_v3 = vpop.eup %1116 }
 0x10c   : > { %v1119_v4 = vpop.eup %1118 }
 0x10d   : > { %v1121_v5 = vpop.eup %1120  ;;  %v524_v6 = vpack.c.bf16 %v1119_v4, %v1115_v2 }
 0x10e   : > { %v525_v7 = vpack.c.bf16 %v1117_v3, %v1121_v5  ;;  %v953_v3 = vld [vmem:[#allocation2] ss:$0 sm:$0xff] }
 0x10f   : > { %1038 = vmatprep.mubr.msk.bf16.mxu1 %vm549_vm1, %v524_v6 }
 0x110   : > { %1039 = vmatmul.mubr.msk.bf16.gmra.mxu1 %vm549_vm1, %v525_v7 }
 0x1b8   : > { %v1028_v10 = vpop.f32.mrf.mxu0 }
 0x1b9   : > { %v617_v16 = vadd.f32 %v1028_v10, %v942_v11 }
 0x1ba   : > { %v608_v12 = vpop.f32.mrf.mxu0 }
 0x1bb   : > { %v609_v13 = vadd.f32 %v942_v11, %v608_v12 }
 0x1bc   : > { %v1029_v14 = vpop.f32.mrf.mxu0 }
 0x1bd   : > { %v620_v15 = vadd.f32 %v1029_v14, %v942_v11  ;;  %1122 = vtanh.f32 %v609_v13 }
 0x1be   : > { %v611_v17 = vpop.f32.mrf.mxu0 }
 0x1bf   : > { %v612_v18 = vadd.f32 %v942_v11, %v611_v17  ;;  %1124 = vtanh.f32 %v620_v15 }
 0x1c0   : > { %v1032_v19 = vpop.f32.mrf.mxu1 }
 0x1c1   : > { %1126 = vtanh.f32 %v612_v18  ;;  %v633_v24 = vadd.f32 %v1032_v19, %v942_v11 }
 0x1c2   : > { %1128 = vtanh.f32 %v617_v16  ;;  %v624_v20 = vpop.f32.mrf.mxu1 }
 0x1c3   : > { %v625_v21 = vadd.f32 %v942_v11, %v624_v20 }
 0x1c4   : > { %v1033_v22 = vpop.f32.mrf.mxu1 }
 0x1c5   : > { %v636_v23 = vadd.f32 %v1033_v22, %v942_v11  ;;  %1130 = vtanh.f32 %v625_v21 }
 0x1c6   : > { %v627_v25 = vpop.f32.mrf.mxu1 }
 0x1c7   : > { %v628_v26 = vadd.f32 %v942_v11, %v627_v25  ;;  %1132 = vtanh.f32 %v636_v23 }
 0x1c8   : > { %v1036_v27 = vpop.f32.mrf.mxu1 }
 0x1c9   : > { %1134 = vtanh.f32 %v628_v26  ;;  %v649_v35 = vadd.f32 %v1036_v27, %v942_v11 }
 0x1ca   : > { %1136 = vtanh.f32 %v633_v24  ;;  %v640_v28 = vpop.f32.mrf.mxu1  ;;  %v1123_v30 = vpop.eup %1122 }
 0x1cb   : > { %v641_v29 = vadd.f32 %v942_v11, %v640_v28 }
 0x1cc   : > { %v1037_v31 = vpop.f32.mrf.mxu1  ;;  %v1125_v32 = vpop.eup %1124 }
 0x1cd   : > { %v652_v33 = vadd.f32 %v1037_v31, %v942_v11  ;;  %1138 = vtanh.f32 %v641_v29 }
 0x1ce   : > { %v1127_v34 = vpop.eup %1126  ;;  %v643_v36 = vpop.f32.mrf.mxu1 }
 0x1cf   : > { %v1129_v37 = vpop.eup %1128  ;;  %v644_v38 = vadd.f32 %v942_v11, %v643_v36  ;;  %v687_v39 = vpack.c.bf16 %v1127_v34, %v1123_v30  ;;  %1140 = vtanh.f32 %v652_v33 }
 0x1d0   : > { %v688_v40 = vpack.c.bf16 %v1125_v32, %v1129_v37  ;;  %v1040_v41 = vpop.f32.mrf.mxu1 }
 0x1d1   : > { %1142 = vtanh.f32 %v644_v38  ;;  %1046 = vmatprep.mubr.msk.bf16.mxu1 %vm549_vm1, %v687_v39  ;;  %v665_v49 = vadd.f32 %v1040_v41, %v942_v11 }
 0x1d2   : > { %1144 = vtanh.f32 %v649_v35  ;;  %v656_v42 = vpop.f32.mrf.mxu1  ;;  %1047 = vmatmul.mubr.msk.bf16.vlgmr.msra.gmra.mxu1 %vm549_vm1, %v688_v40  ;;  %v1131_v44 = vpop.eup %1130 }
 0x1d3   : > { %v657_v43 = vadd.f32 %v942_v11, %v656_v42 }
 0x1d4   : > { %v1041_v45 = vpop.f32.mrf.mxu1  ;;  %v1133_v46 = vpop.eup %1132 }
 0x1d5   : > { %v668_v47 = vadd.f32 %v1041_v45, %v942_v11  ;;  %1146 = vtanh.f32 %v657_v43 }
 0x1d6   : > { %v1135_v48 = vpop.eup %1134  ;;  %v659_v50 = vpop.f32.mrf.mxu1 }
 0x1d7   : > { %v1137_v51 = vpop.eup %1136  ;;  %v660_v52 = vadd.f32 %v942_v11, %v659_v50  ;;  %v689_v53 = vpack.c.bf16 %v1135_v48, %v1131_v44  ;;  %1148 = vtanh.f32 %v668_v47 }
 0x1d8   : > { %v690_v54 = vpack.c.bf16 %v1133_v46, %v1137_v51 }
 0x1d9   : > { %1150 = vtanh.f32 %v660_v52  ;;  %1050 = vmatprep.mubr.msk.bf16.mxu1 %vm549_vm1, %v689_v53 }
 0x1da   : > { %1152 = vtanh.f32 %v665_v49  ;;  %1051 = vmatmul.mubr.msk.bf16.gmra.mxu1 %vm549_vm1, %v690_v54  ;;  %v1139_v55 = vpop.eup %1138 }
 0x1dc   : > { %v1141_v56 = vpop.eup %1140 }
 0x1de   : > { %v1143_v57 = vpop.eup %1142 }
 0x1df   : > { %v1145_v58 = vpop.eup %1144  ;;  %v691_v59 = vpack.c.bf16 %v1143_v57, %v1139_v55 }
 0x1e0   : > { %v692_v60 = vpack.c.bf16 %v1141_v56, %v1145_v58 }
 0x1e1   : > { %1054 = vmatprep.mubr.msk.bf16.mxu1 %vm549_vm1, %v691_v59 }
 0x1e2   : > { %1055 = vmatmul.mubr.msk.bf16.gmra.mxu1 %vm549_vm1, %v692_v60  ;;  %v1147_v61 = vpop.eup %1146 }
 0x1e4   : > { %v1149_v62 = vpop.eup %1148 }
 0x1e6   : > { %v1151_v63 = vpop.eup %1150 }
 0x1e7   : > { %v1153_v0 = vpop.eup %1152  ;;  %v693_v1 = vpack.c.bf16 %v1151_v63, %v1147_v61 }
 0x1e8   : > { %v694_v2 = vpack.c.bf16 %v1149_v62, %v1153_v0 }
 0x1e9   : > { %1058 = vmatprep.mubr.msk.bf16.mxu1 %vm549_vm1, %v693_v1 }
 0x1ea   : > { %1059 = vmatmul.mubr.msk.bf16.gmra.mxu1 %vm549_vm1, %v694_v2 }
 0x292   : > { %v1048_v4 = vpop.f32.mrf.mxu1 }
 0x293   : > { %v785_v5 = vadd.f32 %v1048_v4, %v953_v3 }
 0x294   : > { %v776_v6 = vpop.f32.mrf.mxu1 }
 0x295   : > { %842 = vst.msk [vmem:[%s1277_s10 + $0x10] sm:$0xff] %vm839_vm2, %v785_v5  ;;  %v777_v7 = vadd.f32 %v953_v3, %v776_v6 }
 0x296   : > { %v1049_v8 = vpop.f32.mrf.mxu1 }
 0x297   : > { %840 = vst.msk [vmem:[%s1277_s10] sm:$0xff] %vm839_vm2, %v777_v7  ;;  %v788_v9 = vadd.f32 %v1049_v8, %v953_v3 }
 0x298   : > { %v779_v10 = vpop.f32.mrf.mxu1 }
 0x299   : > { %843 = vst.msk [vmem:[%s1277_s10 + $0x18] sm:$0xff] %vm839_vm2, %v788_v9  ;;  %v780_v11 = vadd.f32 %v953_v3, %v779_v10 }
 0x29a   : > { %v1052_v12 = vpop.f32.mrf.mxu1 }
 0x29b   : > { %841 = vst.msk [vmem:[%s1277_s10 + $0x8] sm:$0xff] %vm839_vm2, %v780_v11  ;;  %v801_v13 = vadd.f32 %v1052_v12, %v953_v3 }
 0x29c   : > { %v792_v14 = vpop.f32.mrf.mxu1 }
 0x29d   : > { %846 = vst.msk [vmem:[%s1277_s10 + $0x30] sm:$0xff] %vm839_vm2, %v801_v13  ;;  %v793_v15 = vadd.f32 %v953_v3, %v792_v14 }
 0x29e   : > { %v1053_v16 = vpop.f32.mrf.mxu1 }
 0x29f   : > { %844 = vst.msk [vmem:[%s1277_s10 + $0x20] sm:$0xff] %vm839_vm2, %v793_v15  ;;  %v804_v17 = vadd.f32 %v1053_v16, %v953_v3 }
 0x2a0   : > { %v795_v18 = vpop.f32.mrf.mxu1 }
 0x2a1   : > { %847 = vst.msk [vmem:[%s1277_s10 + $0x38] sm:$0xff] %vm839_vm2, %v804_v17  ;;  %v796_v19 = vadd.f32 %v953_v3, %v795_v18 }
 0x2a2   : > { %v1056_v20 = vpop.f32.mrf.mxu1 }
 0x2a3   : > { %845 = vst.msk [vmem:[%s1277_s10 + $0x28] sm:$0xff] %vm839_vm2, %v796_v19  ;;  %v817_v21 = vadd.f32 %v1056_v20, %v953_v3 }
 0x2a4   : > { %v808_v22 = vpop.f32.mrf.mxu1 }
 0x2a5   : > { %850 = vst.msk [vmem:[%s1277_s10 + $0x50] sm:$0xff] %vm839_vm2, %v817_v21  ;;  %v809_v23 = vadd.f32 %v953_v3, %v808_v22 }
 0x2a6   : > { %v1057_v24 = vpop.f32.mrf.mxu1 }
 0x2a7   : > { %848 = vst.msk [vmem:[%s1277_s10 + $0x40] sm:$0xff] %vm839_vm2, %v809_v23  ;;  %v820_v25 = vadd.f32 %v1057_v24, %v953_v3 }
 0x2a8   : > { %v811_v26 = vpop.f32.mrf.mxu1 }
 0x2a9   : > { %851 = vst.msk [vmem:[%s1277_s10 + $0x58] sm:$0xff] %vm839_vm2, %v820_v25  ;;  %v812_v27 = vadd.f32 %v953_v3, %v811_v26 }
 0x2aa   : > { %v1060_v28 = vpop.f32.mrf.mxu1 }
 0x2ab   : > { %849 = vst.msk [vmem:[%s1277_s10 + $0x48] sm:$0xff] %vm839_vm2, %v812_v27  ;;  %v833_v29 = vadd.f32 %v1060_v28, %v953_v3 }
 0x2ac   : > { %v824_v30 = vpop.f32.mrf.mxu1 }
 0x2ad   : > { %854 = vst.msk [vmem:[%s1277_s10 + $0x70] sm:$0xff] %vm839_vm2, %v833_v29  ;;  %v825_v31 = vadd.f32 %v953_v3, %v824_v30 }
 0x2ae   : > { %v1061_v32 = vpop.f32.mrf.mxu1 }
 0x2af   : > { %852 = vst.msk [vmem:[%s1277_s10 + $0x60] sm:$0xff] %vm839_vm2, %v825_v31  ;;  %v836_v33 = vadd.f32 %v1061_v32, %v953_v3 }
 0x2b0   : > { %v827_v34 = vpop.f32.mrf.mxu1 }
 0x2b1   : > { %855 = vst.msk [vmem:[%s1277_s10 + $0x78] sm:$0xff] %vm839_vm2, %v836_v33  ;;  %v828_v35 = vadd.f32 %v953_v3, %v827_v34 }
 0x2b3   : > { %853 = vst.msk [vmem:[%s1277_s10 + $0x68] sm:$0xff] %vm839_vm2, %v828_v35 }
 0x2b4 PF: > { %s19_s26 = sadd.s32 1, %s1160_s26  }
 0x2b5   : > { %p16_p4 = scmp.ge.s32.totalorder %s19_s26, 6  }
 0x2b7   :  { %18 = sbr.rel (!%p16_p4) target bundleno = 3 (0x3), region = 78 }

</bundles_post_ra>
